<compile_context>
chip_gen: v6e
topology: v6e:2x2x1
jax: 0.10.0
libtpu: 0.0.40
codegen_flags: <defaults>
</compile_context>

<pallas_src>
import math
from functools import partial

import jax
import jax.numpy as jnp
from jax import lax
from jax.experimental import pallas as pl
from jax.experimental.pallas import tpu as pltpu

# ---------------------------------------------------------------------------
# Per-generation VMEM budget / tile defaults
# ---------------------------------------------------------------------------
_VMEM_CAP = None


def _tpu_vmem_capacity_bytes():
    global _VMEM_CAP
    if _VMEM_CAP is None:
        try:
            _VMEM_CAP = int(pltpu.get_tpu_info().vmem_capacity_bytes)
        except Exception:
            _VMEM_CAP = 128 * 1024 * 1024  # v5e/v6e physical VMEM
    return _VMEM_CAP


def _vmem_limit_bytes():
    # ~90 MiB on v5e/v6e (128 MiB physical), ~45 MiB on v7x (64 MiB physical).
    cap = _tpu_vmem_capacity_bytes()
    return int(min(0.70 * cap, 100 * 1024 * 1024))


def _default_block_m():
    # 512-row projection tiles on v5e/v6e (~85% of HBM roofline), 256 on v7x.
    return 512 if _tpu_vmem_capacity_bytes() >= 96 * 1024 * 1024 else 256


def _pick_tile(dim, target, align=8):
    """Largest tile <= target that is a multiple of `align` and divides `dim`
    exactly (needed on reduction axes); falls back to the full dimension."""
    if dim <= target:
        return dim
    t = (target // align) * align
    while t >= align:
        if dim % t == 0:
            return t
        t -= align
    return dim


# ---------------------------------------------------------------------------
# Fused multi-output linear projection kernel (tiled & pipelined over rows)
# ---------------------------------------------------------------------------
def _fused_linear_kernel(x_ref, *refs, n_out, compute_dtype):
    w_refs = refs[:n_out]
    b_refs = refs[n_out:2 * n_out]
    o_refs = refs[2 * n_out:]
    x = x_ref[...].astype(compute_dtype)          # activations read once
    for w_ref, b_ref, o_ref in zip(w_refs, b_refs, o_refs):
        acc = jnp.dot(x, w_ref[...].astype(compute_dtype),
                      preferred_element_type=jnp.float32)
        o_ref[...] = (acc + b_ref[...]).astype(o_ref.dtype)


def pallas_fused_linear(x, ws, bs, *, out_dtype=jnp.float32,
                        compute_dtype=jnp.float32, block_m=None):
    """x:(M,K); ws:[(K,Ni)]; bs:[(Ni,)] -> list of (M,Ni) in out_dtype.
    One pallas_call: x streamed in row tiles, all weights resident, each
    output stored lane-dense (no host-side slicing of a packed result)."""
    M, K = x.shape
    n_out = len(ws)
    if block_m is None:
        block_m = _default_block_m()
    tm = M if M <= block_m else block_m
    grid = (pl.cdiv(M, tm),)

    in_specs = [pl.BlockSpec((tm, K), lambda i: (i, 0))]        # stream rows
    for w in ws:
        n = w.shape[1]
        in_specs.append(pl.BlockSpec((K, n), lambda i: (0, 0)))  # resident W
    for b in bs:
        n = b.shape[0]
        in_specs.append(pl.BlockSpec((1, n), lambda i: (0, 0)))  # resident b

    out_shape = tuple(jax.ShapeDtypeStruct((M, w.shape[1]), out_dtype) for w in ws)
    out_specs = tuple(pl.BlockSpec((tm, w.shape[1]), lambda i: (i, 0)) for w in ws)

    outs = pl.pallas_call(
        partial(_fused_linear_kernel, n_out=n_out, compute_dtype=compute_dtype),
        out_shape=out_shape,
        grid_spec=pltpu.PrefetchScalarGridSpec(
            num_scalar_prefetch=0,
            grid=grid,
            in_specs=in_specs,
            out_specs=list(out_specs),
        ),
        compiler_params=pltpu.CompilerParams(
            dimension_semantics=("parallel",),       # row tiles across TCs
            vmem_limit_bytes=_vmem_limit_bytes(),
        ),
    )(x, *ws, *[b.reshape(1, -1) for b in bs])
    return list(outs)


# ---------------------------------------------------------------------------
# Flash-style multi-head attention kernel
#   grid = (B*H, L_tiles, S_tiles); online softmax with m/l/acc VMEM scratch.
#   Scale is already folded into the query projection weights.
# ---------------------------------------------------------------------------
def _flash_mha_kernel(q_ref, k_ref, v_ref, o_ref, *rest,
                      compute_dtype, has_attn):
    if has_attn:
        a_ref, m_sc, l_sc, acc_sc = rest
    else:
        a_ref = None
        m_sc, l_sc, acc_sc = rest

    si = pl.program_id(2)

    @pl.when(si == 0)
    def _init():
        m_sc[...] = jnp.full_like(m_sc, -jnp.inf)
        l_sc[...] = jnp.zeros_like(l_sc)
        acc_sc[...] = jnp.zeros_like(acc_sc)

    q = q_ref[0].astype(compute_dtype)             # (tL, E)   pre-scaled
    k = k_ref[0].astype(compute_dtype)             # (tS, E)
    v = v_ref[0].astype(compute_dtype)             # (tS, Ev)

    # Contract last dims directly -- no materialized k transpose.
    s = lax.dot_general(q, k, (((1,), (1,)), ((), ())),
                        preferred_element_type=jnp.float32)      # (tL, tS) f32

    m_prev = m_sc[...]
    m_new = jnp.maximum(m_prev, jnp.max(s, axis=-1, keepdims=True))
    alpha = jnp.exp(m_prev - m_new)
    p = jnp.exp(s - m_new)
    l_sc[...] = alpha * l_sc[...] + jnp.sum(p, axis=-1, keepdims=True)
    # Deferred normalization: accumulate unnormalized exp(s-m) @ v.
    acc_sc[...] = alpha * acc_sc[...] + jnp.dot(
        p.astype(compute_dtype), v, preferred_element_type=jnp.float32)
    m_sc[...] = m_new

    @pl.when(si == pl.num_programs(2) - 1)
    def _finalize():
        inv_l = pl.reciprocal(l_sc[...])           # exact; only (tL, 1) values
        o_ref[0] = (acc_sc[...] * inv_l).astype(o_ref.dtype)
        if has_attn:
            # Valid because return_attn forces a single S step (tS == S),
            # so p here already covers the full row and m/l are final.
            a_ref[0] = (p * inv_l).astype(a_ref.dtype)


def pallas_flash_attention(q, k, v, *, compute_dtype=jnp.float32,
                           out_dtype=jnp.float32, return_attn=False,
                           attn_dtype=jnp.float32,
                           tl_target=256, ts_target=512):
    """q:(BH,L,E), k:(BH,S,E), v:(BH,S,Ev) -> (BH,L,Ev) [, (BH,L,S)]."""
    BH, L, E = q.shape
    S = k.shape[1]
    Ev = v.shape[2]

    tl = L if L <= tl_target else tl_target                  # partial L ok
    ts = S if return_attn else _pick_tile(S, ts_target, 8)   # S must divide
    grid = (BH, pl.cdiv(L, tl), pl.cdiv(S, ts))

    in_specs = [
        pl.BlockSpec((1, tl, E), lambda b, l, s: (b, l, 0)),
        pl.BlockSpec((1, ts, E), lambda b, l, s: (b, s, 0)),
        pl.BlockSpec((1, ts, Ev), lambda b, l, s: (b, s, 0)),
    ]
    o_shape = jax.ShapeDtypeStruct((BH, L, Ev), out_dtype)
    o_spec = pl.BlockSpec((1, tl, Ev), lambda b, l, s: (b, l, 0))
    if return_attn:
        out_shape = (o_shape, jax.ShapeDtypeStruct((BH, L, S), attn_dtype))
        out_specs = (o_spec, pl.BlockSpec((1, tl, ts), lambda b, l, s: (b, l, s)))
    else:
        out_shape = o_shape
        out_specs = o_spec

    return pl.pallas_call(
        partial(_flash_mha_kernel, compute_dtype=compute_dtype,
                has_attn=return_attn),
        out_shape=out_shape,
        grid_spec=pltpu.PrefetchScalarGridSpec(
            num_scalar_prefetch=0,
            grid=grid,
            in_specs=in_specs,
            out_specs=out_specs,
            scratch_shapes=[
                pltpu.VMEM((tl, 1), jnp.float32),    # running max m
                pltpu.VMEM((tl, 1), jnp.float32),    # running sum l
                pltpu.VMEM((tl, Ev), jnp.float32),   # unnormalized acc
            ],
        ),
        compiler_params=pltpu.CompilerParams(
            dimension_semantics=("parallel", "parallel", "arbitrary"),
            vmem_limit_bytes=_vmem_limit_bytes(),
        ),
    )(q, k, v)


# ---------------------------------------------------------------------------
# AttentionLayer forward (glue in JAX, compute in Pallas)
# ---------------------------------------------------------------------------
def attention_layer_forward(params, queries, keys, values, attn_mask=None,
                            tau=None, delta=None, *, n_heads,
                            compute_dtype=jnp.float32, return_attn=False,
                            attn_dtype=jnp.float32):
    """`params` must come from prepare_params() (scale pre-folded into wq/bq).
    compute_dtype=bf16 runs MXU operands + inter-kernel activations in bf16
    (f32 accumulation / softmax) -- recommended default on v6e/v7x."""
    # TODO(synk): attn_mask / tau / delta are accepted but ignored -- this
    # implements FullAttention with mask_flag=False (no dropout) only.
    B, L, d_model = queries.shape
    _, S, _ = keys.shape
    H = n_heads
    HEk = params["wq"].shape[1]   # H * d_keys
    HEv = params["wv"].shape[1]   # H * d_values
    Ek = HEk // H
    Ev = HEv // H

    inter_dtype = jnp.bfloat16 if compute_dtype == jnp.bfloat16 else jnp.float32

    q2d = queries.reshape(B * L, d_model)
    if queries is keys and keys is values:
        # Self-attention: one kernel launch, activations read once, three
        # separate lane-dense outputs (no host-side slicing copies).
        q, k, v = pallas_fused_linear(
            q2d, [params["wq"], params["wk"], params["wv"]],
            [params["bq"], params["bk"], params["bv"]],
            out_dtype=inter_dtype, compute_dtype=compute_dtype)
    elif keys is values:
        # Cross-attention with shared K/V source: fuse the K and V projections.
        (q,) = pallas_fused_linear(q2d, [params["wq"]], [params["bq"]],
                                   out_dtype=inter_dtype, compute_dtype=compute_dtype)
        k, v = pallas_fused_linear(
            keys.reshape(B * S, d_model), [params["wk"], params["wv"]],
            [params["bk"], params["bv"]],
            out_dtype=inter_dtype, compute_dtype=compute_dtype)
    else:
        (q,) = pallas_fused_linear(q2d, [params["wq"]], [params["bq"]],
                                   out_dtype=inter_dtype, compute_dtype=compute_dtype)
        (k,) = pallas_fused_linear(keys.reshape(B * S, d_model),
                                   [params["wk"]], [params["bk"]],
                                   out_dtype=inter_dtype, compute_dtype=compute_dtype)
        (v,) = pallas_fused_linear(values.reshape(B * S, d_model),
                                   [params["wv"]], [params["bv"]],
                                   out_dtype=inter_dtype, compute_dtype=compute_dtype)

    # Canonical per-(batch, head) layout so the attention grid can address one
    # head per step via BlockSpec (works for any d_keys, no lane relayouts in
    # the kernel). The transposes are cheap XLA copies, bf16-sized when bf16.
    qh = q.reshape(B, L, H, Ek).transpose(0, 2, 1, 3).reshape(B * H, L, Ek)
    kh = k.reshape(B, S, H, Ek).transpose(0, 2, 1, 3).reshape(B * H, S, Ek)
    vh = v.reshape(B, S, H, Ev).transpose(0, 2, 1, 3).reshape(B * H, S, Ev)

    res = pallas_flash_attention(qh, kh, vh, compute_dtype=compute_dtype,
                                 out_dtype=inter_dtype, return_attn=return_attn,
                                 attn_dtype=attn_dtype)
    if return_attn:
        out_bh, attn = res
        attn = attn.reshape(B, H, L, S)
    else:
        out_bh, attn = res, None

    out2d = out_bh.reshape(B, H, L, Ev).transpose(0, 2, 1, 3).reshape(B * L, HEv)
    (out,) = pallas_fused_linear(out2d, [params["wo"]], [params["bo"]],
                                 out_dtype=jnp.float32,
                                 compute_dtype=compute_dtype)
    return out.reshape(B, L, d_model), attn


# ---------------------------------------------------------------------------
# Deterministic parameter init (PyTorch nn.Linear-style uniform bounds)
# ---------------------------------------------------------------------------
def init_params(key, d_model, n_heads):
    d_keys = d_model // n_heads
    d_values = d_model // n_heads
    ks = jax.random.split(key, 8)

    def lin(kw, kb, fan_in, fan_out):
        bound = 1.0 / math.sqrt(fan_in)
        w = jax.random.uniform(kw, (fan_in, fan_out), jnp.float32, -bound, bound)
        b = jax.random.uniform(kb, (fan_out,), jnp.float32, -bound, bound)
        return w, b

    wq, bq = lin(ks[0], ks[1], d_model, d_keys * n_heads)
    wk, bk = lin(ks[2], ks[3], d_model, d_keys * n_heads)
    wv, bv = lin(ks[4], ks[5], d_model, d_values * n_heads)
    wo, bo = lin(ks[6], ks[7], d_values * n_heads, d_model)
    return dict(wq=wq, bq=bq, wk=wk, bk=bk, wv=wv, bv=bv, wo=wo, bo=bo)


def prepare_params(params, n_heads):
    """One-time host prep: fold the 1/sqrt(d_keys) softmax scale into the
    query projection so no per-forward / in-kernel scaling is needed."""
    d_keys = params["wq"].shape[1] // n_heads
    scale = 1.0 / math.sqrt(d_keys)
    p = dict(params)
    p["wq"] = params["wq"] * scale
    p["bq"] = params["bq"] * scale
    return p


# ---------------------------------------------------------------------------
# Reference (pure JAX) for sanity checks
# ---------------------------------------------------------------------------
def reference_forward(params, queries, keys, values, n_heads):
    B, L, d_model = queries.shape
    _, S, _ = keys.shape
    H = n_heads
    q = queries @ params["wq"] + params["bq"]
    k = keys @ params["wk"] + params["bk"]
    v = values @ params["wv"] + params["bv"]
    E = q.shape[-1] // H
    q = q.reshape(B, L, H, E)
    k = k.reshape(B, S, H, E)
    v = v.reshape(B, S, H, E)
    scores = jnp.einsum("blhe,bshe->bhls", q, k) / math.sqrt(E)
    attn = jax.nn.softmax(scores, axis=-1)
    out = jnp.einsum("bhls,bshd->blhd", attn, v).reshape(B, L, H * E)
    out = out @ params["wo"] + params["bo"]
    return out, attn


if __name__ == "__main__":
    B, L, S, d_model, n_heads = 2, 8, 8, 32, 4

    key = jax.random.PRNGKey(0)
    kp, kx, kq, kkv = jax.random.split(key, 4)
    base_params = init_params(kp, d_model, n_heads)
    params = prepare_params(base_params, n_heads)   # scale folded into wq/bq

    # --- Self-attention (fused QKV path), f32 compute, attn weights returned ---
    x = jax.random.normal(kx, (B, L, d_model), jnp.float32)
    self_fwd = jax.jit(lambda p, t: attention_layer_forward(
        p, t, t, t, n_heads=n_heads, return_attn=True))
    out, attn = self_fwd(params, x)
    out = jax.block_until_ready(out)
    attn = jax.block_until_ready(attn)

    ref_out, ref_attn = reference_forward(base_params, x, x, x, n_heads)
    assert out.shape == (B, L, d_model)
    assert attn.shape == (B, n_heads, L, S)
    assert jnp.allclose(out, ref_out, atol=5e-3, rtol=5e-3)
    assert jnp.allclose(attn, ref_attn, atol=5e-3, rtol=5e-3)

    # --- Cross-attention (fused KV path), bf16 MXU operands, attn dropped ---
    q_in = jax.random.normal(kq, (B, L, d_model), jnp.float32)
    kv_in = jax.random.normal(kkv, (B, S, d_model), jnp.float32)
    cross_fwd = jax.jit(lambda p, qq, kv: attention_layer_forward(
        p, qq, kv, kv, n_heads=n_heads,
        compute_dtype=jnp.bfloat16, return_attn=False))
    out2, attn2 = cross_fwd(params, q_in, kv_in)
    out2 = jax.block_until_ready(out2)

    ref_out2, _ = reference_forward(base_params, q_in, kv_in, kv_in, n_heads)
    assert attn2 is None
    assert out2.shape == (B, L, d_model)
    assert jnp.allclose(out2, ref_out2, atol=3e-2, rtol=3e-2)

    print("KERNEL_OK")
</pallas_src>

<mosaic_0001>
module attributes {stable_mosaic.version = 11 : i64} {
  func.func @_fused_linear_kernel(%arg0: i32, %arg1: memref<16x32xf32, #tpu.memory_space<vmem>>, %arg2: memref<32x32xf32, #tpu.memory_space<vmem>>, %arg3: memref<32x32xf32, #tpu.memory_space<vmem>>, %arg4: memref<32x32xf32, #tpu.memory_space<vmem>>, %arg5: memref<1x32xf32, #tpu.memory_space<vmem>>, %arg6: memref<1x32xf32, #tpu.memory_space<vmem>>, %arg7: memref<1x32xf32, #tpu.memory_space<vmem>>, %arg8: memref<16x32xf32, #tpu.memory_space<vmem>>, %arg9: memref<16x32xf32, #tpu.memory_space<vmem>>, %arg10: memref<16x32xf32, #tpu.memory_space<vmem>>) attributes {dimension_semantics = [#tpu.dimension_semantics<parallel>], iteration_bounds = array<i64: 1>, scalar_prefetch = 0 : i64, scratch_operands = 0 : i64, tpu.core_type = #tpu.core_type<tc>, window_params = [{transform_indices = @transform_0, window_bounds = array<i64: 16, 32>}, {pipeline_mode = #tpu.pipeline_mode<synchronous>, transform_indices = @transform_1, window_bounds = array<i64: 32, 32>}, {pipeline_mode = #tpu.pipeline_mode<synchronous>, transform_indices = @transform_2, window_bounds = array<i64: 32, 32>}, {pipeline_mode = #tpu.pipeline_mode<synchronous>, transform_indices = @transform_3, window_bounds = array<i64: 32, 32>}, {pipeline_mode = #tpu.pipeline_mode<synchronous>, transform_indices = @transform_4, window_bounds = array<i64: 1, 32>}, {pipeline_mode = #tpu.pipeline_mode<synchronous>, transform_indices = @transform_5, window_bounds = array<i64: 1, 32>}, {pipeline_mode = #tpu.pipeline_mode<synchronous>, transform_indices = @transform_6, window_bounds = array<i64: 1, 32>}, {transform_indices = @transform_7, window_bounds = array<i64: 16, 32>}, {transform_indices = @transform_8, window_bounds = array<i64: 16, 32>}, {transform_indices = @transform_9, window_bounds = array<i64: 16, 32>}]} {
    %c0 = arith.constant 0 : index
    %c0_0 = arith.constant 0 : index
    %0 = vector.load %arg1[%c0, %c0_0] : memref<16x32xf32, #tpu.memory_space<vmem>>, vector<16x32xf32>
    %c0_1 = arith.constant 0 : index
    %c0_2 = arith.constant 0 : index
    %1 = vector.load %arg2[%c0_1, %c0_2] : memref<32x32xf32, #tpu.memory_space<vmem>>, vector<32x32xf32>
    %cst = arith.constant dense<0.000000e+00> : vector<16x32xf32>
    %2 = tpu.matmul %0, %1, %cst {dimension_numbers = #tpu.dot_dimension_numbers<[1], [0], [0], [1], [0, 0, 1, 1], [], []>} : vector<16x32xf32>, vector<32x32xf32>, vector<16x32xf32> -> vector<16x32xf32>
    %c0_3 = arith.constant 0 : index
    %c0_4 = arith.constant 0 : index
    %3 = vector.load %arg5[%c0_3, %c0_4] : memref<1x32xf32, #tpu.memory_space<vmem>>, vector<1x32xf32>
    %4 = vector.broadcast %3 : vector<1x32xf32> to vector<16x32xf32>
    %5 = arith.addf %2, %4 : vector<16x32xf32>
    %c0_5 = arith.constant 0 : index
    %c0_6 = arith.constant 0 : index
    %6 = vector.load %arg8[%c0_5, %c0_6] : memref<16x32xf32, #tpu.memory_space<vmem>>, vector<16x32xf32>
    tpu.vector_store %arg8[%c0_5, %c0_6], %5 {strides = array<i32>} : memref<16x32xf32, #tpu.memory_space<vmem>>, vector<16x32xf32>,
    %c0_7 = arith.constant 0 : index
    %c0_8 = arith.constant 0 : index
    %7 = vector.load %arg3[%c0_7, %c0_8] : memref<32x32xf32, #tpu.memory_space<vmem>>, vector<32x32xf32>
    %cst_9 = arith.constant dense<0.000000e+00> : vector<16x32xf32>
    %8 = tpu.matmul %0, %7, %cst_9 {dimension_numbers = #tpu.dot_dimension_numbers<[1], [0], [0], [1], [0, 0, 1, 1], [], []>} : vector<16x32xf32>, vector<32x32xf32>, vector<16x32xf32> -> vector<16x32xf32>
    %c0_10 = arith.constant 0 : index
    %c0_11 = arith.constant 0 : index
    %9 = vector.load %arg6[%c0_10, %c0_11] : memref<1x32xf32, #tpu.memory_space<vmem>>, vector<1x32xf32>
    %10 = vector.broadcast %9 : vector<1x32xf32> to vector<16x32xf32>
    %11 = arith.addf %8, %10 : vector<16x32xf32>
    %c0_12 = arith.constant 0 : index
    %c0_13 = arith.constant 0 : index
    %12 = vector.load %arg9[%c0_12, %c0_13] : memref<16x32xf32, #tpu.memory_space<vmem>>, vector<16x32xf32>
    tpu.vector_store %arg9[%c0_12, %c0_13], %11 {strides = array<i32>} : memref<16x32xf32, #tpu.memory_space<vmem>>, vector<16x32xf32>,
    %c0_14 = arith.constant 0 : index
    %c0_15 = arith.constant 0 : index
    %13 = vector.load %arg4[%c0_14, %c0_15] : memref<32x32xf32, #tpu.memory_space<vmem>>, vector<32x32xf32>
    %cst_16 = arith.constant dense<0.000000e+00> : vector<16x32xf32>
    %14 = tpu.matmul %0, %13, %cst_16 {dimension_numbers = #tpu.dot_dimension_numbers<[1], [0], [0], [1], [0, 0, 1, 1], [], []>} : vector<16x32xf32>, vector<32x32xf32>, vector<16x32xf32> -> vector<16x32xf32>
    %c0_17 = arith.constant 0 : index
    %c0_18 = arith.constant 0 : index
    %15 = vector.load %arg7[%c0_17, %c0_18] : memref<1x32xf32, #tpu.memory_space<vmem>>, vector<1x32xf32>
    %16 = vector.broadcast %15 : vector<1x32xf32> to vector<16x32xf32>
    %17 = arith.addf %14, %16 : vector<16x32xf32>
    %c0_19 = arith.constant 0 : index
    %c0_20 = arith.constant 0 : index
    %18 = vector.load %arg10[%c0_19, %c0_20] : memref<16x32xf32, #tpu.memory_space<vmem>>, vector<16x32xf32>
    tpu.vector_store %arg10[%c0_19, %c0_20], %17 {strides = array<i32>} : memref<16x32xf32, #tpu.memory_space<vmem>>, vector<16x32xf32>,
    return
  }
  func.func @transform_0(%arg0: i32) -> (i32, i32) {
    %c0_i32 = arith.constant 0 : i32
    %c0_i32_0 = arith.constant 0 : i32
    return %arg0, %c0_i32 : i32, i32
  }
  func.func @transform_1(%arg0: i32) -> (i32, i32) {
    %c0_i32 = arith.constant 0 : i32
    %c0_i32_0 = arith.constant 0 : i32
    %c0_i32_1 = arith.constant 0 : i32
    return %c0_i32, %c0_i32_0 : i32, i32
  }
  func.func @transform_2(%arg0: i32) -> (i32, i32) {
    %c0_i32 = arith.constant 0 : i32
    %c0_i32_0 = arith.constant 0 : i32
    %c0_i32_1 = arith.constant 0 : i32
    return %c0_i32, %c0_i32_0 : i32, i32
  }
  func.func @transform_3(%arg0: i32) -> (i32, i32) {
    %c0_i32 = arith.constant 0 : i32
    %c0_i32_0 = arith.constant 0 : i32
    %c0_i32_1 = arith.constant 0 : i32
    return %c0_i32, %c0_i32_0 : i32, i32
  }
  func.func @transform_4(%arg0: i32) -> (i32, i32) {
    %c0_i32 = arith.constant 0 : i32
    %c0_i32_0 = arith.constant 0 : i32
    %c0_i32_1 = arith.constant 0 : i32
    return %c0_i32, %c0_i32_0 : i32, i32
  }
  func.func @transform_5(%arg0: i32) -> (i32, i32) {
    %c0_i32 = arith.constant 0 : i32
    %c0_i32_0 = arith.constant 0 : i32
    %c0_i32_1 = arith.constant 0 : i32
    return %c0_i32, %c0_i32_0 : i32, i32
  }
  func.func @transform_6(%arg0: i32) -> (i32, i32) {
    %c0_i32 = arith.constant 0 : i32
    %c0_i32_0 = arith.constant 0 : i32
    %c0_i32_1 = arith.constant 0 : i32
    return %c0_i32, %c0_i32_0 : i32, i32
  }
  func.func @transform_7(%arg0: i32) -> (i32, i32) {
    %c0_i32 = arith.constant 0 : i32
    %c0_i32_0 = arith.constant 0 : i32
    return %arg0, %c0_i32 : i32, i32
  }
  func.func @transform_8(%arg0: i32) -> (i32, i32) {
    %c0_i32 = arith.constant 0 : i32
    %c0_i32_0 = arith.constant 0 : i32
    return %arg0, %c0_i32 : i32, i32
  }
  func.func @transform_9(%arg0: i32) -> (i32, i32) {
    %c0_i32 = arith.constant 0 : i32
    %c0_i32_0 = arith.constant 0 : i32
    return %arg0, %c0_i32 : i32, i32
  }
}

module attributes {stable_mosaic.version = 11 : i64} {
  func.func @_flash_mha_kernel(%arg0: i32, %arg1: i32, %arg2: i32, %arg3: memref<1x8x8xf32, #tpu.memory_space<vmem>>, %arg4: memref<1x8x8xf32, #tpu.memory_space<vmem>>, %arg5: memref<1x8x8xf32, #tpu.memory_space<vmem>>, %arg6: memref<1x8x8xf32, #tpu.memory_space<vmem>>, %arg7: memref<1x8x8xf32, #tpu.memory_space<vmem>>, %arg8: memref<8x1xf32, #tpu.memory_space<vmem>>, %arg9: memref<8x1xf32, #tpu.memory_space<vmem>>, %arg10: memref<8x8xf32, #tpu.memory_space<vmem>>) attributes {dimension_semantics = [#tpu.dimension_semantics<parallel>, #tpu.dimension_semantics<parallel>, #tpu.dimension_semantics<arbitrary>], iteration_bounds = array<i64: 8, 1, 1>, scalar_prefetch = 0 : i64, scratch_operands = 3 : i64, tpu.core_type = #tpu.core_type<tc>, window_params = [{transform_indices = @transform_0, window_bounds = array<i64: 1, 8, 8>}, {transform_indices = @transform_1, window_bounds = array<i64: 1, 8, 8>}, {transform_indices = @transform_2, window_bounds = array<i64: 1, 8, 8>}, {transform_indices = @transform_3, window_bounds = array<i64: 1, 8, 8>}, {transform_indices = @transform_4, window_bounds = array<i64: 1, 8, 8>}]} {
    %c0_i32 = arith.constant 0 : i32
    %0 = arith.cmpi eq, %arg2, %c0_i32 : i32
    %1 = arith.extui %0 : i1 to i32
    %c0_i32_0 = arith.constant 0 : i32
    %2 = arith.cmpi ne, %1, %c0_i32_0 : i32
    scf.if %2 {
      %cst_26 = arith.constant 0xFF800000 : f32
      %35 = vector.broadcast %cst_26 : f32 to vector<8x1xf32>
      %c0_27 = arith.constant 0 : index
      %c0_28 = arith.constant 0 : index
      %36 = vector.load %arg8[%c0_27, %c0_28] : memref<8x1xf32, #tpu.memory_space<vmem>>, vector<8x1xf32>
      tpu.vector_store %arg8[%c0_27, %c0_28], %35 {strides = array<i32>} : memref<8x1xf32, #tpu.memory_space<vmem>>, vector<8x1xf32>,
      %cst_29 = arith.constant 0.000000e+00 : f32
      %37 = vector.broadcast %cst_29 : f32 to vector<8x1xf32>
      %c0_30 = arith.constant 0 : index
      %c0_31 = arith.constant 0 : index
      %38 = vector.load %arg9[%c0_30, %c0_31] : memref<8x1xf32, #tpu.memory_space<vmem>>, vector<8x1xf32>
      tpu.vector_store %arg9[%c0_30, %c0_31], %37 {strides = array<i32>} : memref<8x1xf32, #tpu.memory_space<vmem>>, vector<8x1xf32>,
      %cst_32 = arith.constant 0.000000e+00 : f32
      %39 = vector.broadcast %cst_32 : f32 to vector<8x8xf32>
      %c0_33 = arith.constant 0 : index
      %c0_34 = arith.constant 0 : index
      %40 = vector.load %arg10[%c0_33, %c0_34] : memref<8x8xf32, #tpu.memory_space<vmem>>, vector<8x8xf32>
      tpu.vector_store %arg10[%c0_33, %c0_34], %39 {strides = array<i32>} : memref<8x8xf32, #tpu.memory_space<vmem>>, vector<8x8xf32>,
    } else {
    }
    %c0 = arith.constant 0 : index
    %c0_1 = arith.constant 0 : index
    %c0_2 = arith.constant 0 : index
    %3 = vector.load %arg3[%c0, %c0_1, %c0_2] : memref<1x8x8xf32, #tpu.memory_space<vmem>>, vector<1x8x8xf32>
    %4 = vector.shape_cast %3 : vector<1x8x8xf32> to vector<8x8xf32>
    %c0_3 = arith.constant 0 : index
    %c0_4 = arith.constant 0 : index
    %c0_5 = arith.constant 0 : index
    %5 = vector.load %arg4[%c0_3, %c0_4, %c0_5] : memref<1x8x8xf32, #tpu.memory_space<vmem>>, vector<1x8x8xf32>
    %6 = vector.shape_cast %5 : vector<1x8x8xf32> to vector<8x8xf32>
    %c0_6 = arith.constant 0 : index
    %c0_7 = arith.constant 0 : index
    %c0_8 = arith.constant 0 : index
    %7 = vector.load %arg5[%c0_6, %c0_7, %c0_8] : memref<1x8x8xf32, #tpu.memory_space<vmem>>, vector<1x8x8xf32>
    %8 = vector.shape_cast %7 : vector<1x8x8xf32> to vector<8x8xf32>
    %cst = arith.constant dense<0.000000e+00> : vector<8x8xf32>
    %9 = tpu.matmul %4, %6, %cst {dimension_numbers = #tpu.dot_dimension_numbers<[1], [1], [0], [0], [0, 0, 1, 0], [], []>} : vector<8x8xf32>, vector<8x8xf32>, vector<8x8xf32> -> vector<8x8xf32>
    %c0_9 = arith.constant 0 : index
    %c0_10 = arith.constant 0 : index
    %10 = vector.load %arg8[%c0_9, %c0_10] : memref<8x1xf32, #tpu.memory_space<vmem>>, vector<8x1xf32>
    %cst_11 = arith.constant dense<0xFF800000> : vector<8xf32>
    %11 = vector.multi_reduction <maximumf>, %9, %cst_11 [1] : vector<8x8xf32> to vector<8xf32>
    %12 = vector.shape_cast %11 : vector<8xf32> to vector<8x1xf32>
    %13 = arith.maximumf %10, %12 : vector<8x1xf32>
    %14 = arith.subf %10, %13 : vector<8x1xf32>
    %15 = math.exp %14 : vector<8x1xf32>
    %16 = vector.broadcast %13 : vector<8x1xf32> to vector<8x8xf32>
    %17 = arith.subf %9, %16 : vector<8x8xf32>
    %18 = math.exp %17 : vector<8x8xf32>
    %c0_12 = arith.constant 0 : index
    %c0_13 = arith.constant 0 : index
    %19 = vector.load %arg9[%c0_12, %c0_13] : memref<8x1xf32, #tpu.memory_space<vmem>>, vector<8x1xf32>
    %20 = arith.mulf %15, %19 : vector<8x1xf32>
    %cst_14 = arith.constant dense<0.000000e+00> : vector<8xf32>
    %21 = vector.multi_reduction <add>, %18, %cst_14 [1] : vector<8x8xf32> to vector<8xf32>
    %22 = vector.shape_cast %21 : vector<8xf32> to vector<8x1xf32>
    %23 = arith.addf %20, %22 : vector<8x1xf32>
    %c0_15 = arith.constant 0 : index
    %c0_16 = arith.constant 0 : index
    %24 = vector.load %arg9[%c0_15, %c0_16] : memref<8x1xf32, #tpu.memory_space<vmem>>, vector<8x1xf32>
    tpu.vector_store %arg9[%c0_15, %c0_16], %23 {strides = array<i32>} : memref<8x1xf32, #tpu.memory_space<vmem>>, vector<8x1xf32>,
    %c0_17 = arith.constant 0 : index
    %c0_18 = arith.constant 0 : index
    %25 = vector.load %arg10[%c0_17, %c0_18] : memref<8x8xf32, #tpu.memory_space<vmem>>, vector<8x8xf32>
    %26 = vector.broadcast %15 : vector<8x1xf32> to vector<8x8xf32>
    %27 = arith.mulf %26, %25 : vector<8x8xf32>
    %cst_19 = arith.constant dense<0.000000e+00> : vector<8x8xf32>
    %28 = tpu.matmul %18, %8, %cst_19 {dimension_numbers = #tpu.dot_dimension_numbers<[1], [0], [0], [1], [0, 0, 1, 1], [], []>} : vector<8x8xf32>, vector<8x8xf32>, vector<8x8xf32> -> vector<8x8xf32>
    %29 = arith.addf %27, %28 : vector<8x8xf32>
    %c0_20 = arith.constant 0 : index
    %c0_21 = arith.constant 0 : index
    %30 = vector.load %arg10[%c0_20, %c0_21] : memref<8x8xf32, #tpu.memory_space<vmem>>, vector<8x8xf32>
    tpu.vector_store %arg10[%c0_20, %c0_21], %29 {strides = array<i32>} : memref<8x8xf32, #tpu.memory_space<vmem>>, vector<8x8xf32>,
    %c0_22 = arith.constant 0 : index
    %c0_23 = arith.constant 0 : index
    %31 = vector.load %arg8[%c0_22, %c0_23] : memref<8x1xf32, #tpu.memory_space<vmem>>, vector<8x1xf32>
    tpu.vector_store %arg8[%c0_22, %c0_23], %13 {strides = array<i32>} : memref<8x1xf32, #tpu.memory_space<vmem>>, vector<8x1xf32>,
    %c0_i32_24 = arith.constant 0 : i32
    %32 = arith.cmpi eq, %arg2, %c0_i32_24 : i32
    %33 = arith.extui %32 : i1 to i32
    %c0_i32_25 = arith.constant 0 : i32
    %34 = arith.cmpi ne, %33, %c0_i32_25 : i32
    scf.if %34 {
      %c0_26 = arith.constant 0 : index
      %c0_27 = arith.constant 0 : index
      %35 = vector.load %arg9[%c0_26, %c0_27] : memref<8x1xf32, #tpu.memory_space<vmem>>, vector<8x1xf32>
      %36 = tpu.reciprocal %35 : vector<8x1xf32> -> vector<8x1xf32>
      %c0_28 = arith.constant 0 : index
      %c0_29 = arith.constant 0 : index
      %37 = vector.load %arg10[%c0_28, %c0_29] : memref<8x8xf32, #tpu.memory_space<vmem>>, vector<8x8xf32>
      %38 = vector.broadcast %36 : vector<8x1xf32> to vector<8x8xf32>
      %39 = arith.mulf %37, %38 : vector<8x8xf32>
      %c0_30 = arith.constant 0 : index
      %c0_31 = arith.constant 0 : index
      %c0_32 = arith.constant 0 : index
      %40 = vector.load %arg6[%c0_30, %c0_31, %c0_32] : memref<1x8x8xf32, #tpu.memory_space<vmem>>, vector<1x8x8xf32>
      %41 = vector.shape_cast %40 : vector<1x8x8xf32> to vector<8x8xf32>
      %42 = vector.shape_cast %39 : vector<8x8xf32> to vector<1x8x8xf32>
      tpu.vector_store %arg6[%c0_30, %c0_31, %c0_32], %42 {strides = array<i32>} : memref<1x8x8xf32, #tpu.memory_space<vmem>>, vector<1x8x8xf32>,
      %43 = vector.broadcast %36 : vector<8x1xf32> to vector<8x8xf32>
      %44 = arith.mulf %18, %43 : vector<8x8xf32>
      %c0_33 = arith.constant 0 : index
      %c0_34 = arith.constant 0 : index
      %c0_35 = arith.constant 0 : index
      %45 = vector.load %arg7[%c0_33, %c0_34, %c0_35] : memref<1x8x8xf32, #tpu.memory_space<vmem>>, vector<1x8x8xf32>
      %46 = vector.shape_cast %45 : vector<1x8x8xf32> to vector<8x8xf32>
      %47 = vector.shape_cast %44 : vector<8x8xf32> to vector<1x8x8xf32>
      tpu.vector_store %arg7[%c0_33, %c0_34, %c0_35], %47 {strides = array<i32>} : memref<1x8x8xf32, #tpu.memory_space<vmem>>, vector<1x8x8xf32>,
    } else {
    }
    return
  }
  func.func @transform_0(%arg0: i32, %arg1: i32, %arg2: i32) -> (i32, i32, i32) {
    %c0_i32 = arith.constant 0 : i32
    %c0_i32_0 = arith.constant 0 : i32
    return %arg0, %arg1, %c0_i32 : i32, i32, i32
  }
  func.func @transform_1(%arg0: i32, %arg1: i32, %arg2: i32) -> (i32, i32, i32) {
    %c0_i32 = arith.constant 0 : i32
    %c0_i32_0 = arith.constant 0 : i32
    return %arg0, %arg2, %c0_i32 : i32, i32, i32
  }
  func.func @transform_2(%arg0: i32, %arg1: i32, %arg2: i32) -> (i32, i32, i32) {
    %c0_i32 = arith.constant 0 : i32
    %c0_i32_0 = arith.constant 0 : i32
    return %arg0, %arg2, %c0_i32 : i32, i32, i32
  }
  func.func @transform_3(%arg0: i32, %arg1: i32, %arg2: i32) -> (i32, i32, i32) {
    %c0_i32 = arith.constant 0 : i32
    %c0_i32_0 = arith.constant 0 : i32
    return %arg0, %arg1, %c0_i32 : i32, i32, i32
  }
  func.func @transform_4(%arg0: i32, %arg1: i32, %arg2: i32) -> (i32, i32, i32) {
    %c0_i32 = arith.constant 0 : i32
    return %arg0, %arg1, %arg2 : i32, i32, i32
  }
}

module attributes {stable_mosaic.version = 11 : i64} {
  func.func @_fused_linear_kernel(%arg0: i32, %arg1: memref<16x32xf32, #tpu.memory_space<vmem>>, %arg2: memref<32x32xf32, #tpu.memory_space<vmem>>, %arg3: memref<1x32xf32, #tpu.memory_space<vmem>>, %arg4: memref<16x32xf32, #tpu.memory_space<vmem>>) attributes {dimension_semantics = [#tpu.dimension_semantics<parallel>], iteration_bounds = array<i64: 1>, scalar_prefetch = 0 : i64, scratch_operands = 0 : i64, tpu.core_type = #tpu.core_type<tc>, window_params = [{transform_indices = @transform_0, window_bounds = array<i64: 16, 32>}, {pipeline_mode = #tpu.pipeline_mode<synchronous>, transform_indices = @transform_1, window_bounds = array<i64: 32, 32>}, {pipeline_mode = #tpu.pipeline_mode<synchronous>, transform_indices = @transform_2, window_bounds = array<i64: 1, 32>}, {transform_indices = @transform_3, window_bounds = array<i64: 16, 32>}]} {
    %c0 = arith.constant 0 : index
    %c0_0 = arith.constant 0 : index
    %0 = vector.load %arg1[%c0, %c0_0] : memref<16x32xf32, #tpu.memory_space<vmem>>, vector<16x32xf32>
    %c0_1 = arith.constant 0 : index
    %c0_2 = arith.constant 0 : index
    %1 = vector.load %arg2[%c0_1, %c0_2] : memref<32x32xf32, #tpu.memory_space<vmem>>, vector<32x32xf32>
    %cst = arith.constant dense<0.000000e+00> : vector<16x32xf32>
    %2 = tpu.matmul %0, %1, %cst {dimension_numbers = #tpu.dot_dimension_numbers<[1], [0], [0], [1], [0, 0, 1, 1], [], []>} : vector<16x32xf32>, vector<32x32xf32>, vector<16x32xf32> -> vector<16x32xf32>
    %c0_3 = arith.constant 0 : index
    %c0_4 = arith.constant 0 : index
    %3 = vector.load %arg3[%c0_3, %c0_4] : memref<1x32xf32, #tpu.memory_space<vmem>>, vector<1x32xf32>
    %4 = vector.broadcast %3 : vector<1x32xf32> to vector<16x32xf32>
    %5 = arith.addf %2, %4 : vector<16x32xf32>
    %c0_5 = arith.constant 0 : index
    %c0_6 = arith.constant 0 : index
    %6 = vector.load %arg4[%c0_5, %c0_6] : memref<16x32xf32, #tpu.memory_space<vmem>>, vector<16x32xf32>
    tpu.vector_store %arg4[%c0_5, %c0_6], %5 {strides = array<i32>} : memref<16x32xf32, #tpu.memory_space<vmem>>, vector<16x32xf32>,
    return
  }
  func.func @transform_0(%arg0: i32) -> (i32, i32) {
    %c0_i32 = arith.constant 0 : i32
    %c0_i32_0 = arith.constant 0 : i32
    return %arg0, %c0_i32 : i32, i32
  }
  func.func @transform_1(%arg0: i32) -> (i32, i32) {
    %c0_i32 = arith.constant 0 : i32
    %c0_i32_0 = arith.constant 0 : i32
    %c0_i32_1 = arith.constant 0 : i32
    return %c0_i32, %c0_i32_0 : i32, i32
  }
  func.func @transform_2(%arg0: i32) -> (i32, i32) {
    %c0_i32 = arith.constant 0 : i32
    %c0_i32_0 = arith.constant 0 : i32
    %c0_i32_1 = arith.constant 0 : i32
    return %c0_i32, %c0_i32_0 : i32, i32
  }
  func.func @transform_3(%arg0: i32) -> (i32, i32) {
    %c0_i32 = arith.constant 0 : i32
    %c0_i32_0 = arith.constant 0 : i32
    return %arg0, %c0_i32 : i32, i32
  }
}

</mosaic_0001>

<bundles_post_ra>
// kernel: _lambda_.5
= control target key start
LH: loop header
LB: loop body
LE: loop exit
PB: predicated region body
PF: predicated region fallthrough
CT: control target
= control target key end

     0   :  { %vm28_vm0 = vcmask 261120   ;;  %s224_s0 = inlined_call_operand.vmem [shape: f32[16,32], index: 0, kind: input, shape index: {}]   ;;  %s225_s1 = inlined_call_operand.vmem [shape: f32[32,32], index: 1, kind: input, shape index: {}]   ;;  %s226_s2 = inlined_call_operand.vmem [shape: f32[1,32], index: 2, kind: input, shape index: {}]   ;;  %s227_s3 = inlined_call_operand.hbm [shape: f32[16,32], index: 3, kind: output, shape index: {}]  }
   0x1   :  { %v20_v0 = vld [vmem:[%s225_s1 + $0x18] sm:$0xff]  ;;  %v19_v1 = vld [vmem:[%s225_s1 + $0x10] sm:$0xff]  ;;  %v15_v2 = vld [vmem:[%s224_s0] sm:$0xff] }
   0x2   :  { %137 = vmatprep.subr.mxu0 %v20_v0  ;;  %v18_v3 = vld [vmem:[%s225_s1 + $0x8] sm:$0xff]  ;;  %145 = vmatprep.mubr.msk.f32.mxu0 %vm28_vm0, %v15_v2 }
   0x3   :  { %138 = vmatpush3.msra.mxu0 %v20_v0 }
   0x4   :  { %8 = vsyncpa [#allocation3], 0  ;;  %139 = vmatprep.subr.mxu0 %v19_v1  ;;  %v17_v4 = vld [vmem:[%s225_s1] sm:$0xff]  ;;  %v16_v5 = vld [vmem:[%s224_s0 + $0x8] sm:$0xff]  ;;  %s173_s26 = smov [#allocation2]  }
   0x5   :  { %140 = vmatpush3.msra.mxu0 %v19_v1  ;;  %v128_v6 = vld [vmem:[%s226_s2] ss:$0 sm:$0xff]  ;;  %s117_s27 = sshll.u32 %s173_s26, 4  ;;  %s118_s27 = int_to_ptr.vmem [resolvable:$true] %s117_s27 }
   0x6   :  { %141 = vmatprep.subr.mxu0 %v18_v3  ;;  %s151_s0 = scalar_lea.vmem %s118_s27, 256  ;;  %p156_p1 = scmp.lt.s32.totalorder %s118_s27, %s118_s27 }
   0x7   :  { %142 = vmatpush3.msra.mxu0 %v18_v3  ;;  %p152_p0 = scmp.ne.s32.totalorder %s118_s27, %s151_s0  ;;  %p157_p2 = scmp.lt.s32.totalorder %s151_s0, %s151_s0 }
   0x8   :  { %143 = vmatprep.subr.mxu0 %v17_v4 }
   0x9   :  { %144 = vmatpush3.msra.mxu0 %v17_v4  ;;  %p158_p3 = por %p157_p2, %p156_p1 }
   0xa   :  { %146 = vmatmul.mubr.msk.f32.vlgmr.msra.gmra.mxu0 %vm28_vm0, %v16_v5 }
   0xb   :  { %p159_p4 = pnand %p158_p3, %p152_p0 }
  0xca   :  { %v147_v7 = vpop.f32.mrf.mxu0 }
  0xcb   :  { %v107_v8 = vadd.f32 %v147_v7, %v128_v6 }
  0xcc   :  { %v101_v9 = vpop.f32.mrf.mxu0 }
  0xcd   :  { %111 = vst.msk [vmem:[#allocation2 + $0x8] sm:$0xff] %vm28_vm0, %v107_v8  ;;  %v102_v10 = vadd.f32 %v128_v6, %v101_v9 }
  0xcf   :  { %110 = vst.msk [vmem:[#allocation2] sm:$0xff] %vm28_vm0, %v102_v10 }
  0xd0   :  { %162 = shalt.err (!%p159_p4)
}
  0xd1   :  { %s174_s1 = smov 128   ;;  %s175_s2 = smov 8  }
  0xd2   :  { %123 = dma.vmem_to_hbm [thread:$0]  %s118_s27, 256, %s227_s3, [#allocation3], %s174_s1, %s174_s1, %s175_s2  }
  0xd3   :  { %171 = dma.done.wait [#allocation3], 256  }
  0xd4   :  { %172 = vsyncadd [#allocation3], 4294967040 }
  0xd5   :  { %127 = vsyncpa [#allocation3], 1 }

// kernel: _lambda_.4
= control target key start
LH: loop header
LB: loop body
LE: loop exit
PB: predicated region body
PF: predicated region fallthrough
CT: control target
= control target key end

     0   :  { %10 = vsyncpa [#allocation6], 0  ;;  %s1014_s0 = inlined_call_operand.vmem [shape: f32[8,8,8], index: 0, kind: input, shape index: {}]   ;;  %s1015_s1 = inlined_call_operand.vmem [shape: f32[8,8,8], index: 1, kind: input, shape index: {}]   ;;  %s1016_s2 = inlined_call_operand.vmem [shape: f32[8,8,8], index: 2, kind: input, shape index: {}]   ;;  %s1017_s3 = inlined_call_operand.vmem [shape: f32[8,8,8], index: 3, kind: output, shape index: {0}]   ;;  %s1018_s4 = inlined_call_operand.hbm [shape: f32[8,8,8], index: 4, kind: output, shape index: {1}]  }
   0x1   :  { %12 = vsyncpa [#allocation6 + $0x1], 0  ;;  %s881_s15 = smov 0   ;;  %s883_s16 = smov 0  }
   0x2   :  { %s885_s17 = smov 0   ;;  %s887_s18 = smov 0  }
   0x3   :  { %s889_s19 = smov 0   ;;  %s891_s20 = smov 0  }
   0x4 LB: > { %s675_s21 = sadd.s32 4294967295, %s849_s20   ;;  %s676_s22 = sadd.s32 4294967294, %s849_s20   ;;  %s849_s20 = sphi %s891_s20, %s18_s20   ;;  %s845_s19 = sphi %s889_s19, %s1025_s19   ;;  %s841_s18 = sphi %s887_s18, %s1024_s18   ;;  %s837_s17 = sphi %s885_s17, %s1023_s17   ;;  %s833_s16 = sphi %s883_s16, %s1022_s16   ;;  %s829_s15 = sphi %s881_s15, %s1021_s15  }
   0x5   : > { %s37_s23 = sadd.s32 1, %s845_s19  ;;  %s160_s24 = sadd.s32 1, %s837_s17 }
   0x6   : > { %p39_p0 = scmp.ge.s32.totalorder %s37_s23, 8  ;;  %p170_p1 = scmp.ne.s32.totalorder %s837_s17, %s833_s16 }
   0x7   : > { %p171_p2 = scmp.eq.s32.totalorder %s675_s21, 7  ;;  %p176_p3 = scmp.ne.s32.totalorder %s833_s16, %s829_s15 }
   0x8   : > { %s1027_s23 = smov (%p39_p0, %s37_s23), 0  ;;  %p177_p5 = scmp.eq.s32.totalorder %s676_s22, 7 }
   0x9   : > { %p921_p4 = por %p171_p2, %p170_p1  ;;  %s153_s26 = ssub.s32 %s845_s19, %s1027_s23 }
   0xa   : > { %p679_p6 = scmp.ge.s32.totalorder %s849_s20, 1  ;;  %p158_p7 = scmp.eq.s32.totalorder %s153_s26, 0 }
   0xb   : > { %p928_p8 = por %p177_p5, %p176_p3  ;;  %p225_p9 = scmp.lt.s32.totalorder %s849_s20, 9 }
   0xc   : > { %s934_s28 = scalar_select %p158_p7, %s837_s17, %s160_s24  }
   0xd   : > { %p226_p10 = pnand %p679_p6, %p225_p9 }
   0xe   : > { %p274_p11 = scmp.lt.s32.totalorder (!%p226_p10), %s841_s18, 7  ;;  %s271_s14 = sand.u32 (!%p226_p10), 1, %s833_s16  }
   0xf   : > { %229 = sbr.rel (%p226_p10) target bundleno = 806 (0x326), region = 32  ;;  %s680_s21 = sshll.u32 (!%p226_p10), %s271_s14, 3 }
  0x10   : > { %s689_s22 = sshll.u32 (!%p226_p10), %s841_s18, 7  ;;  %s273_s24 = scalar_lea.vmem (!%p226_p10), [#allocation5], %s680_s21 }
  0x11   : > { %s539_s26 = sshll.u32 (!%p226_p10), %s273_s24, 4  ;;  %s972_s9 = scalar_lea.hbm (!%p226_p10), %s1018_s4, %s689_s22  ;;  %s540_s26 = int_to_ptr.vmem [resolvable:$true] %s539_s26 }
  0x14   : > { %vm309_vm0 = vcmask 64512   ;;  %v851_v0 = vmov 0.0   ;;  %vm852_vm1 = vmmov 0   ;;  %s275_s29 = scalar_select %p274_p11, %s841_s18, 7  ;;  %vm306_vm2 = vcmask 7168  }
  0x15   : > { %310 = vst.msk [vmem:[#allocation4] sm:$0xff] %vm309_vm0, %v851_v0  ;;  %696 = vmatprep.subr.mxu0 %v851_v0  ;;  %698 = vmatprep.mubr.msk.f32.mxu0 %vm852_vm1, %v851_v0  ;;  %v853_v3 = vmov -inf   ;;  %v854_v7 = vmov 0   ;;  %s521_s18 = scalar_lea.sflag [#allocation6], %s271_s14 }
  0x16   : > { %701 = vmatprep.subr.mxu1 %v851_v0  ;;  %703 = vmatprep.mubr.msk.f32.mxu1 %vm852_vm1, %v851_v0  ;;  %s939_s30 = sshll.u32 %s275_s29, 3  ;;  %307 = vst.msk [vmem:[#allocation2] sm:$0xff] %vm306_vm2, %v853_v3  ;;  %308 = vst.msk [vmem:[#allocation3] sm:$0xff] %vm306_vm2, %v851_v0 }
  0x17   : > { %s287_s7 = scalar_lea.vmem %s1015_s1, %s939_s30  ;;  %s280_s10 = scalar_lea.vmem %s1014_s0, %s939_s30  ;;  %765 = vset.pattern.permute.xlu0 %v854_v7  ;;  %766 = vset.pattern.permute.xlu1 %v854_v7 }
  0x18   : > { %v312_v1 = vld [vmem:[%s287_s7] sm:$0xff]  ;;  %s294_s13 = scalar_lea.vmem %s1016_s2, %s939_s30  ;;  %s301_s6 = scalar_lea.vmem %s1017_s3, %s939_s30 }
  0x19   : > { %697 = vmatpush3.xpose.msk.msra.mxu0 %vm309_vm0, %v312_v1  ;;  %v311_v2 = vld [vmem:[%s280_s10] sm:$0xff]  ;;  %s773_s10 = scalar_lea.vmem %s540_s26, 128  ;;  %s855_s30 = smov [#allocation5]  }
  0x1a   : > { %v313_v12 = vld [vmem:[%s294_s13] sm:$0xff]  ;;  %p774_p12 = scmp.ne.s32.totalorder %s540_s26, %s773_s10  ;;  %s777_s11 = sshll.u32 %s855_s30, 4  ;;  %s778_s11 = int_to_ptr.vmem [resolvable:$false] %s777_s11 }
  0x1b   : > { %702 = vmatpush3.msra.mxu1 %v313_v12  ;;  %s779_s12 = scalar_lea.vmem %s778_s11, 256  ;;  %p780_p1 = scmp.lt.s32.totalorder %s540_s26, %s778_s11 }
  0x1c   : > { %699 = vmatmul.mubr.msk.f32.vlgmr.msra.gmra.mxu0 %vm309_vm0, %v311_v2  ;;  %v415_v26 = vld [vmem:[#allocation4] sm:$0xff]  ;;  %p775_p13 = pnand %p774_p12, %p921_p4  ;;  %p781_p2 = scmp.lt.s32.totalorder %s779_s12, %s773_s10 }
  0x1d   : > { %v391_v8 = vld [vmem:[#allocation2] sm:$0xff]  ;;  %v407_v20 = vld [vmem:[#allocation3] sm:$0xff] }
  0x1e   : > { %p776_p0 = pneg %p775_p13  ;;  %p782_p3 = por %p781_p2, %p780_p1 }
  0x20   : > { %p783_p5 = pnand %p782_p3, %p776_p0 }
  0xdc   : > { %v387_v4 = vpop.f32.mrf.mxu0 }
  0xdd   : > { %v392_v5 = vsel %vm309_vm0, %v387_v4, -inf }
  0xde   : > { %393 = vmax.xlane.f32.xlu0 %v392_v5  ;;  %v700_v6 = vpop.f32.mrf.mxu0 }
 0x167   : > { %v394_v9 = vpop.xlane.xlu0 %393 }
 0x168   : > { %v395_v10 = vmax.f32 %v391_v8, %v394_v9 }
 0x16a   : > { %v396_v11 = vsub.f32 %v391_v8, %v395_v10  ;;  %497 = vst.msk [vmem:[#allocation2] sm:$0xff] %vm306_vm2, %v395_v10  ;;  %401 = vperm.xlu0 %765, %v395_v10  }
 0x16c   : > { %v397_v17 = vmul.f32 1.442695, %v396_v11 }
 0x1e5   : > { %v402_v13 = vpop.permute.xlu0 %401 }
 0x1e6   : > { %v404_v14 = vsub.f32 %v387_v4, %v402_v13 }
 0x1e8   : > { %v405_v15 = vmul.f32 1.442695, %v404_v14 }
 0x1ea   : > { %767 = vpow2.f32 %v405_v15 }
 0x1eb   : > { %769 = vpow2.f32 %v397_v17 }
 0x1f7   : > { %v768_v16 = vpop.eup %767 }
 0x1f8   : > { %704 = vmatmul.mubr.msk.f32.vlgmr.msra.gmra.mxu1 %vm309_vm0, %v768_v16  ;;  %v409_v18 = vsel %vm309_vm0, %v768_v16, 0.0  ;;  %v770_v19 = vpop.eup %769 }
 0x1f9   : > { %410 = vadd.xlane.f32.xlu1 %v409_v18  ;;  %v408_v21 = vmul.f32 %v770_v19, %v407_v20 }
 0x20a   : > { %418 = vperm.xlu1 %766, %v770_v19  }
 0x282   : > { %v411_v22 = vpop.xlane.xlu1 %410 }
 0x283   : > { %v412_v23 = vadd.f32 %v411_v22, %v408_v21 }
 0x285   : > { %414 = vst.msk [vmem:[#allocation3] sm:$0xff] %vm306_vm2, %v412_v23 }
 0x286   : > { %v419_v27 = vpop.permute.xlu1 %418 }
 0x287   : > { %v421_v28 = vmul.f32 %v419_v27, %v415_v26 }
 0x28c   : > { %v501_v24 = vld [vmem:[#allocation3] sm:$0xff] }
 0x28d   : > { %771 = vrcp.f32 %v501_v24 }
 0x29a   : > { %v772_v25 = vpop.eup %771 }
 0x29b   : > { %506 = vperm.xlu1 %766, %v772_v25  }
 0x2b8   : > { %v491_v29 = vpop.f32.mrf.mxu1 }
 0x2b9   : > { %v495_v30 = vadd.f32 %v491_v29, %v421_v28 }
 0x2ba   : > { %v705_v31 = vpop.f32.mrf.mxu1 }
 0x2bb   : > { %496 = vst.msk [vmem:[#allocation4] sm:$0xff] %vm309_vm0, %v495_v30 }
 0x2c2   : > { %v503_v32 = vld [vmem:[#allocation4] sm:$0xff] }
 0x316   : > { %v507_v33 = vpop.permute.xlu1 %506 }
 0x317   : > { %v509_v34 = vmul.f32 %v507_v33, %v503_v32  ;;  %v511_v35 = vmul.f32 %v768_v16, %v507_v33 }
 0x319   : > { %510 = vst.msk [vmem:[%s301_s6] sm:$0xff] %vm309_vm0, %v509_v34  ;;  %512 = vst.msk [vmem:[%s273_s24] sm:$0xff] %vm309_vm0, %v511_v35 }
 0x31a   : > { %786 = shalt.err (!%p783_p5)
}
 0x31b   : > { %s787_s13 = scalar_lea.hbm %s972_s9, 128  ;;  %s791_s22 = scalar_lea.hbm %s1018_s4, 1024 }
 0x31c   : > { %p788_p6 = scmp.ne.s32.totalorder %s972_s9, %s787_s13  ;;  %p792_p10 = scmp.lt.s32.totalorder %s972_s9, %s1018_s4 }
 0x31d   : > { %p793_p11 = scmp.lt.s32.totalorder %s791_s22, %s787_s13 }
 0x31e   : > { %p789_p7 = pnand %p788_p6, %p921_p4 }
 0x31f   : > { %p794_p12 = por %p793_p11, %p792_p10 }
 0x320   : > { %p790_p9 = pneg %p789_p7 }
 0x322   : > { %p795_p13 = pnand %p794_p12, %p790_p9 }
 0x324   : > { %798 = shalt.err (!%p795_p13)
}
 0x325   : > { %706 = dma.vmem_to_hbm [thread:$0]  (%p921_p4), %s540_s26, 128, %s972_s9, %s521_s18  }
 0x326 PF: > { %p712_p0 = scmp.ge.s32.totalorder %s849_s20, 2  ;;  %s561_s5 = sand.u32 1, %s829_s15  }
 0x327   : > { %s562_s6 = scalar_lea.sflag [#allocation6], %s561_s5 }
 0x328   : > { %p709_p1 = pnand %p712_p0, %p928_p8 }
 0x32a   : > { %p710_p2 = pneg %p709_p1 }
 0x32c   : > { %824 = dma.done.wait (%p710_p2), %s562_s6, 128  }
 0x32d   : > { %826 = vsyncadd (%p710_p2), %s562_s6, 4294967168  ;;  %s18_s20 = sadd.s32 1, %s849_s20   ;;  %s1021_s15 = smov %s833_s16 }
 0x32e   : > { %p15_p3 = scmp.ge.s32.totalorder %s18_s20, 10   ;;  %s1022_s16 = smov %s837_s17 }
 0x32f   : > { %s1023_s17 = smov %s934_s28  ;;  %s1024_s18 = smov %s845_s19 }
 0x330   : > { %s1025_s19 = smov %s1027_s23  ;;  %17 = sbr.rel (!%p15_p3) target bundleno = 4 (0x4), region = 93 }
 0x335   :  { %567 = vsyncpa [#allocation6], 1 }
 0x336   :  { %569 = vsyncpa [#allocation6 + $0x1], 1 }

// kernel: _lambda_.3
= control target key start
LH: loop header
LB: loop body
LE: loop exit
PB: predicated region body
PF: predicated region fallthrough
CT: control target
= control target key end

     0   :  { %15 = vsyncpa [#allocation3], 0  ;;  %s595_s0 = inlined_call_operand.vmem [shape: f32[16,32], index: 0, kind: input, shape index: {}]   ;;  %s596_s1 = inlined_call_operand.hbm [shape: f32[32,32], index: 1, kind: input, shape index: {}]   ;;  %s597_s2 = inlined_call_operand.hbm [shape: f32[32,32], index: 2, kind: input, shape index: {}]   ;;  %s598_s3 = inlined_call_operand.hbm [shape: f32[32,32], index: 3, kind: input, shape index: {}]   ;;  %s599_s4 = inlined_call_operand.vmem [shape: f32[1,32], index: 4, kind: input, shape index: {}]   ;;  %s600_s5 = inlined_call_operand.vmem [shape: f32[1,32], index: 5, kind: input, shape index: {}]   ;;  %s601_s6 = inlined_call_operand.vmem [shape: f32[1,32], index: 6, kind: input, shape index: {}]   ;;  %s602_s7 = inlined_call_operand.vmem [shape: f32[16,32], index: 7, kind: output, shape index: {0}]   ;;  %s603_s8 = inlined_call_operand.vmem [shape: f32[16,32], index: 8, kind: output, shape index: {1}]   ;;  %s604_s9 = inlined_call_operand.vmem [shape: f32[16,32], index: 9, kind: output, shape index: {2}]  }
   0x1   :  { %16 = vsyncpa [#allocation5], 0  ;;  %s486_s30 = smov [#allocation4]   ;;  %s487_s11 = smov [#allocation2]  }
   0x2   :  { %s36_s10 = sshll.u32 %s486_s30, 4  ;;  %s24_s12 = sshll.u32 %s487_s11, 4  ;;  %s37_s10 = int_to_ptr.vmem [resolvable:$true] %s36_s10  ;;  %s25_s12 = int_to_ptr.vmem [resolvable:$true] %s24_s12 }
   0x3   :  { %s430_s13 = scalar_lea.vmem %s37_s10, 512  ;;  %p435_p1 = scmp.lt.s32.totalorder %s37_s10, %s37_s10 }
   0x4   :  { %p431_p0 = scmp.ne.s32.totalorder %s37_s10, %s430_s13  ;;  %p436_p2 = scmp.lt.s32.totalorder %s430_s13, %s430_s13 }
   0x6   :  { %p437_p3 = por %p436_p2, %p435_p1 }
   0x8   :  { %p438_p4 = pnand %p437_p3, %p431_p0 }
   0xa   :  { %441 = shalt.err (!%p438_p4)
}
   0xb   :  { %s488_s14 = smov 128   ;;  %s489_s15 = smov 8  }
   0xc   :  { %42 = dma.hbm_to_vmem [thread:$0]  %s597_s2, 512, %s37_s10, [#allocation5], %s488_s14, %s488_s14, %s489_s15  }
   0xd   :  { %s450_s18 = scalar_lea.vmem %s25_s12, 512  ;;  %p455_p6 = scmp.lt.s32.totalorder %s25_s12, %s25_s12 }
   0xe   :  { %p451_p5 = scmp.ne.s32.totalorder %s25_s12, %s450_s18  ;;  %p456_p7 = scmp.lt.s32.totalorder %s450_s18, %s450_s18 }
  0x10   :  { %p457_p8 = por %p456_p7, %p455_p6 }
  0x12   :  { %p458_p9 = pnand %p457_p8, %p451_p5 }
  0x14   :  { %461 = shalt.err (!%p458_p9)
}
  0x15   :  { %30 = dma.hbm_to_vmem [thread:$0]  %s596_s1, 512, %s25_s12, [#allocation3], %s488_s14, %s488_s14, %s489_s15  }
  0x16   :  { %s490_s21 = smov [#allocation6]  }
  0x17   :  { %s48_s22 = sshll.u32 %s490_s21, 4  ;;  %s49_s22 = int_to_ptr.vmem [resolvable:$true] %s48_s22 }
  0x18   :  { %s470_s23 = scalar_lea.vmem %s49_s22, 512  ;;  %p475_p11 = scmp.lt.s32.totalorder %s49_s22, %s49_s22 }
  0x19   :  { %p471_p10 = scmp.ne.s32.totalorder %s49_s22, %s470_s23  ;;  %p476_p12 = scmp.lt.s32.totalorder %s470_s23, %s470_s23 }
  0x1b   :  { %p477_p13 = por %p476_p12, %p475_p11 }
  0x1d   :  { %p478_p0 = pnand %p477_p13, %p471_p10 }
  0x1f   :  { %481 = shalt.err (!%p478_p0)
}
  0x20   :  { %54 = dma.hbm_to_vmem [thread:$0]  %s598_s3, 512, %s49_s22, [#allocation5], %s488_s14, %s488_s14, %s489_s15  }
  0x21   :  { %482 = dma.done.wait [#allocation3], 512  }
  0x22   :  { %483 = vsyncadd [#allocation3], 4294966784 }
  0x23   :  { %484 = dma.done.wait [#allocation5], 1024  }
  0x24   :  { %485 = vsyncadd [#allocation5], 4294966272  ;;  %v75_v0 = vld [vmem:[#allocation2 + $0x18] sm:$0xff]  ;;  %v74_v1 = vld [vmem:[#allocation2 + $0x10] sm:$0xff]  ;;  %vm83_vm0 = vcmask 261120  }
  0x25   :  { %384 = vmatprep.subr.mxu0 %v75_v0  ;;  %v170_v2 = vld [vmem:[#allocation4 + $0x18] sm:$0xff]  ;;  %v70_v3 = vld [vmem:[%s595_s0] sm:$0xff]  ;;  %v73_v4 = vld [vmem:[#allocation2 + $0x8] sm:$0xff] }
  0x26   :  { %385 = vmatpush3.msra.mxu0 %v75_v0  ;;  %395 = vmatprep.subr.mxu1 %v170_v2  ;;  %v169_v5 = vld [vmem:[#allocation4 + $0x10] sm:$0xff]  ;;  %v72_v6 = vld [vmem:[#allocation2] sm:$0xff]  ;;  %v168_v7 = vld [vmem:[#allocation4 + $0x8] sm:$0xff] }
  0x27   :  { %386 = vmatprep.subr.mxu0 %v74_v1  ;;  %392 = vmatprep.mubr.msk.f32.mxu0 %vm83_vm0, %v70_v3  ;;  %v71_v8 = vld [vmem:[%s595_s0 + $0x8] sm:$0xff]  ;;  %v258_v9 = vld [vmem:[#allocation6 + $0x18] sm:$0xff]  ;;  %v167_v10 = vld [vmem:[#allocation4] sm:$0xff] }
  0x28   :  { %387 = vmatpush3.msra.mxu0 %v74_v1  ;;  %396 = vmatpush3.msra.mxu1 %v170_v2  ;;  %v257_v11 = vld [vmem:[#allocation6 + $0x10] sm:$0xff]  ;;  %v256_v12 = vld [vmem:[#allocation6 + $0x8] sm:$0xff]  ;;  %v255_v13 = vld [vmem:[#allocation6] sm:$0xff] }
  0x29   :  { %388 = vmatprep.subr.mxu0 %v73_v4  ;;  %397 = vmatprep.subr.mxu1 %v169_v5  ;;  %v357_v14 = vld [vmem:[%s599_s4] ss:$0 sm:$0xff] }
  0x2a   :  { %389 = vmatpush3.msra.mxu0 %v73_v4  ;;  %398 = vmatpush3.msra.mxu1 %v169_v5  ;;  %v360_v18 = vld [vmem:[%s600_s5] ss:$0 sm:$0xff] }
  0x2b   :  { %390 = vmatprep.subr.mxu0 %v72_v6  ;;  %399 = vmatprep.subr.mxu1 %v168_v7  ;;  %v363_v23 = vld [vmem:[%s601_s6] ss:$0 sm:$0xff] }
  0x2c   :  { %391 = vmatpush3.msra.mxu0 %v72_v6  ;;  %400 = vmatpush3.msra.mxu1 %v168_v7 }
  0x2d   :  { %393 = vmatmul.mubr.msk.f32.vlgmr.msra.gmra.mxu0 %vm83_vm0, %v71_v8  ;;  %406 = vmatprep.subr.mxu0 %v258_v9 }
  0x2e   :  { %407 = vmatpush3.msra.mxu0 %v258_v9  ;;  %401 = vmatprep.subr.mxu1 %v167_v10 }
  0x2f   :  { %408 = vmatprep.subr.mxu0 %v257_v11  ;;  %402 = vmatpush3.msra.mxu1 %v167_v10 }
  0x30   :  { %409 = vmatpush3.msra.mxu0 %v257_v11  ;;  %403 = vmatprep.mubr.msk.f32.mxu1 %vm83_vm0, %v70_v3 }
  0x31   :  { %410 = vmatprep.subr.mxu0 %v256_v12  ;;  %404 = vmatmul.mubr.msk.f32.vlgmr.msra.gmra.mxu1 %vm83_vm0, %v71_v8 }
  0x32   :  { %411 = vmatpush3.msra.mxu0 %v256_v12  ;;  %414 = vmatprep.mubr.msk.f32.mxu0 %vm83_vm0, %v70_v3 }
  0x33   :  { %412 = vmatprep.subr.mxu0 %v255_v13 }
  0x34   :  { %413 = vmatpush3.msra.mxu0 %v255_v13 }
  0x35   :  { %415 = vmatmul.mubr.msk.f32.vlgmr.msra.gmra.mxu0 %vm83_vm0, %v71_v8 }
  0xed   :  { %v394_v15 = vpop.f32.mrf.mxu0 }
  0xee   :  { %v162_v16 = vadd.f32 %v394_v15, %v357_v14 }
  0xef   :  { %v156_v17 = vpop.f32.mrf.mxu0 }
  0xf0   :  { %166 = vst.msk [vmem:[%s602_s7 + $0x8] sm:$0xff] %vm83_vm0, %v162_v16  ;;  %v157_v19 = vadd.f32 %v357_v14, %v156_v17 }
  0xf1   :  { %v405_v20 = vpop.f32.mrf.mxu1 }
  0xf2   :  { %165 = vst.msk [vmem:[%s602_s7] sm:$0xff] %vm83_vm0, %v157_v19  ;;  %v250_v21 = vadd.f32 %v405_v20, %v360_v18 }
  0xf3   :  { %v244_v22 = vpop.f32.mrf.mxu1 }
  0xf4   :  { %254 = vst.msk [vmem:[%s603_s8 + $0x8] sm:$0xff] %vm83_vm0, %v250_v21  ;;  %v245_v24 = vadd.f32 %v360_v18, %v244_v22 }
  0xf5   :  { %v416_v25 = vpop.f32.mrf.mxu0 }
  0xf6   :  { %253 = vst.msk [vmem:[%s603_s8] sm:$0xff] %vm83_vm0, %v245_v24  ;;  %v338_v26 = vadd.f32 %v416_v25, %v363_v23 }
  0xf7   :  { %v332_v27 = vpop.f32.mrf.mxu0 }
  0xf8   :  { %342 = vst.msk [vmem:[%s604_s9 + $0x8] sm:$0xff] %vm83_vm0, %v338_v26  ;;  %v333_v28 = vadd.f32 %v363_v23, %v332_v27 }
  0xfa   :  { %341 = vst.msk [vmem:[%s604_s9] sm:$0xff] %vm83_vm0, %v333_v28 }
  0xfb   :  { %355 = vsyncpa [#allocation3], 1 }
  0xfc   :  { %356 = vsyncpa [#allocation5], 1 }

</bundles_post_ra>
